<compile_context>
chip_gen: v7x
topology: tpu7x:2x2x1
jax: 0.10.0
libtpu: 0.0.40
codegen_flags: <defaults>
</compile_context>

<pallas_src>
import math
import functools

import jax
import jax.numpy as jnp
from jax.experimental import pallas as pl
from jax.experimental.pallas import tpu as pltpu


_VMEM_LIMIT = 64 * 1024 * 1024  # explicit scoped-VMEM cap; <= physical on v5e/v6e/v7x


def _pick_tile(dim, cap):
    """Largest multiple-of-128 tile <= cap that divides dim, else the full extent.

    TODO(synk): pad long, non-128-divisible sequence lengths instead of letting
    the fallback load the whole axis as one block (fallback is for small dims).
    """
    t = min(cap, dim)
    t -= t % 128
    while t >= 128:
        if dim % t == 0:
            return t
        t -= 128
    return dim


# ----------------------------- Linear kernel ------------------------------ #
def _linear_kernel(x_ref, w_ref, b_ref, o_ref, acc_ref):
    # grid = (M/tm, N/tn, K/tk); K is the innermost ("arbitrary") reduction axis.
    @pl.when(pl.program_id(2) == 0)
    def _():
        acc_ref[...] = jnp.zeros_like(acc_ref)

    # In-kernel cast: activations stream in at their natural dtype (f32 or bf16)
    # and are cast to the weight dtype right before the MXU (no XLA bf16 copy).
    x = x_ref[...].astype(w_ref.dtype)
    acc_ref[...] += jnp.dot(x, w_ref[...], preferred_element_type=jnp.float32)

    @pl.when(pl.program_id(2) == pl.num_programs(2) - 1)
    def _():
        o_ref[...] = (acc_ref[...] + b_ref[...]).astype(o_ref.dtype)


def linear(x2d, w, b, out_dtype=jnp.float32):
    """y = x2d @ w + b, tiled over (M, N, K) with an f32 VMEM accumulator."""
    M, Din = x2d.shape
    Dout = w.shape[1]
    tm = _pick_tile(M, 1024)
    tn = _pick_tile(Dout, 512)
    tk = _pick_tile(Din, 512)
    return pl.pallas_call(
        _linear_kernel,
        out_shape=jax.ShapeDtypeStruct((M, Dout), out_dtype),
        grid=(M // tm, Dout // tn, Din // tk),
        in_specs=[
            pl.BlockSpec((tm, tk), lambda i, j, k: (i, k)),
            pl.BlockSpec((tk, tn), lambda i, j, k: (k, j)),
            pl.BlockSpec((1, tn), lambda i, j, k: (0, j)),
        ],
        out_specs=pl.BlockSpec((tm, tn), lambda i, j, k: (i, j)),
        scratch_shapes=[pltpu.VMEM((tm, tn), jnp.float32)],
        compiler_params=pltpu.CompilerParams(
            dimension_semantics=("parallel", "parallel", "arbitrary"),
            vmem_limit_bytes=_VMEM_LIMIT),
    )(x2d, w, b.reshape(1, Dout))


# --------------------------- Attention kernel ------------------------------ #
def _attention_kernel(*refs, has_mask):
    # q_ref: (h, tq, d_k) bf16   k_ref/v_ref: (h, tkv, d_k) bf16
    # mask_ref (optional): (1, tkv) or (tq, tkv), raw mask (0 => masked)
    # o_ref: (tq, d_model) bf16  scratches: m/l (h, tq, 1) f32, acc (h, tq, d_k) f32
    if has_mask:
        q_ref, k_ref, v_ref, mask_ref, o_ref, m_scr, l_scr, acc_scr = refs
    else:
        q_ref, k_ref, v_ref, o_ref, m_scr, l_scr, acc_scr = refs
        mask_ref = None
    kv = pl.program_id(2)

    @pl.when(kv == 0)
    def _():
        m_scr[...] = jnp.full_like(m_scr, -1e30)
        l_scr[...] = jnp.zeros_like(l_scr)
        acc_scr[...] = jnp.zeros_like(acc_scr)

    # All heads in one leading-batch NT contraction; inputs are already head-major
    # so there is NO per-KV-step relayout. 1/sqrt(d_k) is pre-folded into W_q.
    s = jnp.einsum('hqd,hkd->hqk', q_ref[...], k_ref[...],
                   preferred_element_type=jnp.float32)
    if has_mask:
        # masked_fill(mask == 0, -inf) semantics; -1e30 keeps fully-masked rows
        # NaN-free (they degenerate to a uniform average, like a large-negative fill).
        s = jnp.where(mask_ref[...][None] == 0, -1e30, s)

    # Online softmax across KV tiles.
    m_prev = m_scr[...]
    m_new = jnp.maximum(m_prev, jnp.max(s, axis=-1, keepdims=True))
    alpha = jnp.exp(m_prev - m_new)
    p = jnp.exp(s - m_new)
    l_scr[...] = alpha * l_scr[...] + jnp.sum(p, axis=-1, keepdims=True)
    acc_scr[...] = alpha * acc_scr[...] + jnp.einsum(
        'hqk,hkd->hqd', p.astype(v_ref.dtype), v_ref[...],
        preferred_element_type=jnp.float32)
    m_scr[...] = m_new

    @pl.when(kv == pl.num_programs(2) - 1)
    def _():
        inv_l = pl.reciprocal(l_scr[...], approx=True)      # EUP slot, not VALU
        ctx = acc_scr[...] * inv_l                          # (h, tq, d_k) f32
        hh, tq, dk = ctx.shape
        # Single relayout per q tile (amortized over the whole KV loop), then a
        # lane-dense (tq, d_model) bf16 store for the output-projection linear.
        o_ref[...] = jnp.transpose(ctx, (1, 0, 2)).reshape(tq, hh * dk).astype(o_ref.dtype)


# ------------------------------ MHA wrapper -------------------------------- #
def multi_head_attention(params, query, key, value, mask=None):
    bs, n1, d_model = query.shape
    n2 = key.shape[1]
    h = params["h"]
    d_k = d_model // h
    bf16 = jnp.bfloat16

    # TODO(synk): nn.Dropout is identity in eval mode; training-mode dropout
    # (pltpu.prng_seed / prng_random_bits masking) is not implemented.

    tq = _pick_tile(n1, 128)    # small q tiles: bounded temps + megacore occupancy
    tkv = _pick_tile(n2, 256)   # cap KV tile so (h, tq, tkv) f32 temps stay small

    # Fold 1/sqrt(d_k) into the Q projection: softmax((x@(wq*s)+bq*s)@k^T) ==
    # softmax((q@k^T)/sqrt(d_k)).  Zero per-step scaling work in the kernel.
    scale = 1.0 / math.sqrt(d_k)
    wq_s = params["wq"] * scale
    bq_s = params["bq"] * scale

    # ---- input projections -> head-major layout (one XLA transpose) --------
    if (query is key) and (key is value):
        # Self-attention: fused Q/K/V projection in ONE pallas_call.
        w_qkv = jnp.concatenate([wq_s, params["wk"], params["wv"]], axis=1).astype(bf16)
        b_qkv = jnp.concatenate([bq_s, params["bk"], params["bv"]])
        qkv = linear(query.reshape(-1, d_model), w_qkv, b_qkv, out_dtype=bf16)
        qkv = qkv.reshape(bs, n1, 3, h, d_k).transpose(0, 2, 3, 1, 4)  # (bs,3,h,n1,dk)
        q_arr = k_arr = v_arr = qkv
        q_spec = pl.BlockSpec((None, None, h, tq, d_k), lambda b, qi, kv: (b, 0, 0, qi, 0))
        k_spec = pl.BlockSpec((None, None, h, tkv, d_k), lambda b, qi, kv: (b, 1, 0, kv, 0))
        v_spec = pl.BlockSpec((None, None, h, tkv, d_k), lambda b, qi, kv: (b, 2, 0, kv, 0))
    else:
        q2d = linear(query.reshape(-1, d_model), wq_s.astype(bf16), bq_s, out_dtype=bf16)
        q_arr = q2d.reshape(bs, n1, h, d_k).transpose(0, 2, 1, 3)      # (bs,h,n1,dk)
        q_spec = pl.BlockSpec((None, h, tq, d_k), lambda b, qi, kv: (b, 0, qi, 0))
        if key is value:
            # Cross-attention: fused K/V projection (same input), one pallas_call.
            w_kv = jnp.concatenate([params["wk"], params["wv"]], axis=1).astype(bf16)
            b_kv = jnp.concatenate([params["bk"], params["bv"]])
            kvp = linear(key.reshape(-1, d_model), w_kv, b_kv, out_dtype=bf16)
            kvp = kvp.reshape(bs, n2, 2, h, d_k).transpose(0, 2, 3, 1, 4)  # (bs,2,h,n2,dk)
            k_arr = v_arr = kvp
            k_spec = pl.BlockSpec((None, None, h, tkv, d_k), lambda b, qi, kv: (b, 0, 0, kv, 0))
            v_spec = pl.BlockSpec((None, None, h, tkv, d_k), lambda b, qi, kv: (b, 1, 0, kv, 0))
        else:
            def proj(x, w, b, n):
                y = linear(x.reshape(-1, d_model), w.astype(bf16), b, out_dtype=bf16)
                return y.reshape(bs, n, h, d_k).transpose(0, 2, 1, 3)  # (bs,h,n,dk)
            k_arr = proj(key, params["wk"], params["bk"], n2)
            v_arr = proj(value, params["wv"], params["bv"], n2)
            k_spec = pl.BlockSpec((None, h, tkv, d_k), lambda b, qi, kv: (b, 0, kv, 0))
            v_spec = pl.BlockSpec((None, h, tkv, d_k), lambda b, qi, kv: (b, 0, kv, 0))

    # ---- raw mask streamed as-is; masked_fill done in-kernel ----------------
    has_mask = mask is not None
    in_specs = [q_spec, k_spec, v_spec]
    args = [q_arr, k_arr, v_arr]
    if has_mask:
        if mask.dtype == jnp.bool_:
            mask = mask.astype(jnp.float32)
        mq = mask.shape[1]
        if mq == 1:
            mask_spec = pl.BlockSpec((None, 1, tkv), lambda b, qi, kv: (b, 0, kv))
        else:   # mq == n1 (mask broadcasts over heads only)
            mask_spec = pl.BlockSpec((None, tq, tkv), lambda b, qi, kv: (b, qi, kv))
        in_specs.append(mask_spec)
        args.append(mask)

    kernel = functools.partial(_attention_kernel, has_mask=has_mask)
    ctx = pl.pallas_call(
        kernel,
        out_shape=jax.ShapeDtypeStruct((bs, n1, d_model), bf16),
        grid=(bs, n1 // tq, n2 // tkv),
        in_specs=in_specs,
        out_specs=pl.BlockSpec((None, tq, d_model), lambda b, qi, kv: (b, qi, 0)),
        scratch_shapes=[
            pltpu.VMEM((h, tq, 1), jnp.float32),     # running max m
            pltpu.VMEM((h, tq, 1), jnp.float32),     # running denom l
            pltpu.VMEM((h, tq, d_k), jnp.float32),   # running numerator acc
        ],
        compiler_params=pltpu.CompilerParams(
            dimension_semantics=("parallel", "parallel", "arbitrary"),
            vmem_limit_bytes=_VMEM_LIMIT),
    )(*args)

    # Output projection as a second tiled linear (keeps W_o off the attention
    # kernel's VMEM budget — matters for large d_model on v7x's 64 MiB VMEM).
    out = linear(ctx.reshape(bs * n1, d_model), params["wo"].astype(bf16),
                 params["bo"], out_dtype=jnp.float32)
    return out.reshape(bs, n1, d_model)


# ------------------------------ Param init --------------------------------- #
def init_params(key, d_model, h):
    bound = 1.0 / math.sqrt(d_model)   # PyTorch nn.Linear default init bound
    names = ["q", "k", "v", "o"]
    keys = jax.random.split(key, 2 * len(names))
    params = {"h": h}
    for i, name in enumerate(names):
        # stored as (in, out) so y = x @ w + b
        params["w" + name] = jax.random.uniform(
            keys[2 * i], (d_model, d_model), jnp.float32, -bound, bound)
        params["b" + name] = jax.random.uniform(
            keys[2 * i + 1], (d_model,), jnp.float32, -bound, bound)
    return params


if __name__ == "__main__":
    settings = {"d_model": 32, "h": 4, "dropout_p": 0.1}
    bs, n1, n2 = 2, 8, 8
    d_model = settings["d_model"]

    root = jax.random.PRNGKey(0)
    k_params, k_x, k_q, k_kv, k_v = jax.random.split(root, 5)
    params = init_params(k_params, d_model, settings["h"])

    # 1) Self-attention (fused QKV projection), bs x 1 x n2 padding mask.
    x = jax.random.normal(k_x, (bs, n1, d_model), jnp.float32)
    pad_mask = jnp.ones((bs, 1, n2), jnp.float32).at[:, :, n2 - 2:].set(0.0)
    out_self = multi_head_attention(params, x, x, x, pad_mask)

    # 2) Cross-attention (separate Q + fused KV projection), full causal mask.
    q_in = jax.random.normal(k_q, (bs, n1, d_model), jnp.float32)
    kv_in = jax.random.normal(k_kv, (bs, n2, d_model), jnp.float32)
    causal = jnp.broadcast_to(jnp.tril(jnp.ones((n1, n2), jnp.float32)),
                              (bs, n1, n2))
    out_cross = multi_head_attention(params, q_in, kv_in, kv_in, causal)

    # 3) Fully separate projections, no mask (exercises the mask-free kernel).
    v_in = jax.random.normal(k_v, (bs, n2, d_model), jnp.float32)
    out_nomask = multi_head_attention(params, q_in, kv_in, v_in, None)

    jax.block_until_ready((out_self, out_cross, out_nomask))
    assert out_self.shape == (bs, n1, d_model)
    assert out_cross.shape == (bs, n1, d_model)
    assert out_nomask.shape == (bs, n1, d_model)
    print("KERNEL_OK")
</pallas_src>

<mosaic_0001>
module attributes {stable_mosaic.version = 11 : i64} {
  func.func @_linear_kernel(%arg0: i32, %arg1: i32, %arg2: i32, %arg3: memref<16x32xf32, #tpu.memory_space<vmem>>, %arg4: memref<32x96xbf16, #tpu.memory_space<vmem>>, %arg5: memref<1x96xf32, #tpu.memory_space<vmem>>, %arg6: memref<16x96xbf16, #tpu.memory_space<vmem>>, %arg7: memref<16x96xf32, #tpu.memory_space<vmem>>) attributes {dimension_semantics = [#tpu.dimension_semantics<parallel>, #tpu.dimension_semantics<parallel>, #tpu.dimension_semantics<arbitrary>], iteration_bounds = array<i64: 1, 1, 1>, scalar_prefetch = 0 : i64, scratch_operands = 1 : i64, tpu.core_type = #tpu.core_type<tc>, window_params = [{transform_indices = @transform_0, window_bounds = array<i64: 16, 32>}, {transform_indices = @transform_1, window_bounds = array<i64: 32, 96>}, {transform_indices = @transform_2, window_bounds = array<i64: 1, 96>}, {transform_indices = @transform_3, window_bounds = array<i64: 16, 96>}]} {
    %c0_i32 = arith.constant 0 : i32
    %0 = arith.cmpi eq, %arg2, %c0_i32 : i32
    %1 = arith.extui %0 : i1 to i32
    %c0_i32_0 = arith.constant 0 : i32
    %2 = arith.cmpi ne, %1, %c0_i32_0 : i32
    scf.if %2 {
      %cst_10 = arith.constant 0.000000e+00 : f32
      %13 = vector.broadcast %cst_10 : f32 to vector<16x96xf32>
      %c0_11 = arith.constant 0 : index
      %c0_12 = arith.constant 0 : index
      %14 = vector.load %arg7[%c0_11, %c0_12] : memref<16x96xf32, #tpu.memory_space<vmem>>, vector<16x96xf32>
      tpu.vector_store %arg7[%c0_11, %c0_12], %13 {strides = array<i32>} : memref<16x96xf32, #tpu.memory_space<vmem>>, vector<16x96xf32>,
    } else {
    }
    %c0 = arith.constant 0 : index
    %c0_1 = arith.constant 0 : index
    %3 = vector.load %arg3[%c0, %c0_1] : memref<16x32xf32, #tpu.memory_space<vmem>>, vector<16x32xf32>
    %4 = arith.truncf %3 : vector<16x32xf32> to vector<16x32xbf16>
    %c0_2 = arith.constant 0 : index
    %c0_3 = arith.constant 0 : index
    %5 = vector.load %arg7[%c0_2, %c0_3] : memref<16x96xf32, #tpu.memory_space<vmem>>, vector<16x96xf32>
    %c0_4 = arith.constant 0 : index
    %c0_5 = arith.constant 0 : index
    %6 = vector.load %arg4[%c0_4, %c0_5] : memref<32x96xbf16, #tpu.memory_space<vmem>>, vector<32x96xbf16>
    %cst = arith.constant dense<0.000000e+00> : vector<16x96xf32>
    %7 = tpu.matmul %4, %6, %cst {dimension_numbers = #tpu.dot_dimension_numbers<[1], [0], [0], [1], [0, 0, 1, 1], [], []>} : vector<16x32xbf16>, vector<32x96xbf16>, vector<16x96xf32> -> vector<16x96xf32>
    %8 = arith.addf %5, %7 : vector<16x96xf32>
    %c0_6 = arith.constant 0 : index
    %c0_7 = arith.constant 0 : index
    %9 = vector.load %arg7[%c0_6, %c0_7] : memref<16x96xf32, #tpu.memory_space<vmem>>, vector<16x96xf32>
    tpu.vector_store %arg7[%c0_6, %c0_7], %8 {strides = array<i32>} : memref<16x96xf32, #tpu.memory_space<vmem>>, vector<16x96xf32>,
    %c0_i32_8 = arith.constant 0 : i32
    %10 = arith.cmpi eq, %arg2, %c0_i32_8 : i32
    %11 = arith.extui %10 : i1 to i32
    %c0_i32_9 = arith.constant 0 : i32
    %12 = arith.cmpi ne, %11, %c0_i32_9 : i32
    scf.if %12 {
      %c0_10 = arith.constant 0 : index
      %c0_11 = arith.constant 0 : index
      %13 = vector.load %arg7[%c0_10, %c0_11] : memref<16x96xf32, #tpu.memory_space<vmem>>, vector<16x96xf32>
      %c0_12 = arith.constant 0 : index
      %c0_13 = arith.constant 0 : index
      %14 = vector.load %arg5[%c0_12, %c0_13] : memref<1x96xf32, #tpu.memory_space<vmem>>, vector<1x96xf32>
      %15 = vector.broadcast %14 : vector<1x96xf32> to vector<16x96xf32>
      %16 = arith.addf %13, %15 : vector<16x96xf32>
      %17 = arith.truncf %16 : vector<16x96xf32> to vector<16x96xbf16>
      %c0_14 = arith.constant 0 : index
      %c0_15 = arith.constant 0 : index
      %18 = vector.load %arg6[%c0_14, %c0_15] : memref<16x96xbf16, #tpu.memory_space<vmem>>, vector<16x96xbf16>
      tpu.vector_store %arg6[%c0_14, %c0_15], %17 {strides = array<i32>} : memref<16x96xbf16, #tpu.memory_space<vmem>>, vector<16x96xbf16>,
    } else {
    }
    return
  }
  func.func @transform_0(%arg0: i32, %arg1: i32, %arg2: i32) -> (i32, i32) {
    %c0_i32 = arith.constant 0 : i32
    return %arg0, %arg2 : i32, i32
  }
  func.func @transform_1(%arg0: i32, %arg1: i32, %arg2: i32) -> (i32, i32) {
    %c0_i32 = arith.constant 0 : i32
    return %arg2, %arg1 : i32, i32
  }
  func.func @transform_2(%arg0: i32, %arg1: i32, %arg2: i32) -> (i32, i32) {
    %c0_i32 = arith.constant 0 : i32
    %c0_i32_0 = arith.constant 0 : i32
    return %c0_i32, %arg1 : i32, i32
  }
  func.func @transform_3(%arg0: i32, %arg1: i32, %arg2: i32) -> (i32, i32) {
    %c0_i32 = arith.constant 0 : i32
    return %arg0, %arg1 : i32, i32
  }
}

</mosaic_0001>

<bundles_post_ra>
// kernel: tpu_custom_call.1
= control target key start
LH: loop header
LB: loop body
LE: loop exit
PB: predicated region body
PF: predicated region fallthrough
CT: control target
= control target key end

     0   :  { %8 = vsyncpa [#allocation4], 0  ;;  %s389_s0 = inlined_call_operand.hbm [shape: f32[16,32], index: 0, kind: input, shape index: {}]   ;;  %s390_s1 = inlined_call_operand.hbm [shape: bf16[32,96], index: 1, kind: input, shape index: {}]   ;;  %s391_s2 = inlined_call_operand.hbm [shape: f32[1,96], index: 2, kind: input, shape index: {}]   ;;  %s392_s3 = inlined_call_operand.hbm [shape: bf16[16,96], index: 3, kind: output, shape index: {}]  }
   0x1   :  { %9 = vsyncpa [#allocation7], 0 }
   0x2   :  { %10 = vsyncpa [#allocation5], 0  ;;  %s301_s12 = smov [#allocation6]   ;;  %s207_s16 = scalar_lea.hbm %s390_s1, 256 }
   0x3   :  { %s28_s13 = sshll.u32 %s301_s12, 4  ;;  %p208_p0 = scmp.ne.s32.totalorder %s390_s1, %s207_s16  ;;  %s29_s13 = int_to_ptr.vmem [resolvable:$true] %s28_s13 }
   0x4   :  { %p211_p1 = scmp.lt.u32.totalorder %s207_s16, %s390_s1 }
   0x6   :  { %p213_p2 = pnand %p211_p1, %p208_p0 }
   0x8   :  { %216 = shalt.err (!%p213_p2)
}
   0x9   :  { %s217_s21 = scalar_lea.vmem %s29_s13, 256  ;;  %p222_p4 = scmp.lt.s32.totalorder %s29_s13, %s29_s13 }
   0xa   :  { %p218_p3 = scmp.ne.s32.totalorder %s29_s13, %s217_s21  ;;  %p223_p5 = scmp.lt.s32.totalorder %s217_s21, %s217_s21 }
   0xc   :  { %p224_p6 = por %p223_p5, %p222_p4 }
   0xe   :  { %p225_p7 = pnand %p224_p6, %p218_p3 }
  0x10   :  { %228 = shalt.err (!%p225_p7)
}
  0x11   :  { %s302_s22 = smov 64   ;;  %s303_s23 = smov 4  }
  0x12   :  { %34 = dma.hbm_to_vmem [thread:$0]  %s390_s1, 256, %s29_s13, [#allocation7], %s302_s22, %s302_s22, %s303_s23  }
  0x13   :  { %s304_s26 = smov [#allocation3]   ;;  %s229_s30 = scalar_lea.hbm %s389_s0, 256 }
  0x14   :  { %s16_s27 = sshll.u32 %s304_s26, 4  ;;  %p230_p8 = scmp.ne.s32.totalorder %s389_s0, %s229_s30  ;;  %s17_s27 = int_to_ptr.vmem [resolvable:$true] %s16_s27 }
  0x15   :  { %p233_p9 = scmp.lt.u32.totalorder %s229_s30, %s389_s0 }
  0x17   :  { %p235_p10 = pnand %p233_p9, %p230_p8 }
  0x19   :  { %238 = shalt.err (!%p235_p10)
}
  0x1a   :  { %s239_s8 = scalar_lea.vmem %s17_s27, 256  ;;  %p244_p12 = scmp.lt.s32.totalorder %s17_s27, %s17_s27 }
  0x1b   :  { %p240_p11 = scmp.ne.s32.totalorder %s17_s27, %s239_s8  ;;  %p245_p13 = scmp.lt.s32.totalorder %s239_s8, %s239_s8 }
  0x1d   :  { %p246_p0 = por %p245_p13, %p244_p12 }
  0x1f   :  { %p247_p1 = pnand %p246_p0, %p240_p11 }
  0x21   :  { %250 = shalt.err (!%p247_p1)
}
  0x22   :  { %s305_s1 = smov 128   ;;  %s306_s9 = smov 8  }
  0x23   :  { %22 = dma.hbm_to_vmem [thread:$0]  %s389_s0, 256, %s17_s27, [#allocation4], %s305_s1, %s305_s1, %s306_s9  }
  0x24   :  { %s307_s12 = smov [#allocation8]   ;;  %s251_s16 = scalar_lea.hbm %s391_s2, 16 }
  0x25   :  { %s41_s13 = sshll.u32 %s307_s12, 4  ;;  %p252_p2 = scmp.ne.s32.totalorder %s391_s2, %s251_s16  ;;  %s42_s13 = int_to_ptr.vmem [resolvable:$true] %s41_s13 }
  0x26   :  { %p255_p3 = scmp.lt.u32.totalorder %s251_s16, %s391_s2 }
  0x28   :  { %p257_p4 = pnand %p255_p3, %p252_p2 }
  0x2a   :  { %260 = shalt.err (!%p257_p4)
}
  0x2b   :  { %s261_s21 = scalar_lea.vmem %s42_s13, 16  ;;  %s265_s0 = scalar_lea.vmem %s42_s13, 32 }
  0x2c   :  { %p262_p5 = scmp.ne.s32.totalorder %s42_s13, %s261_s21  ;;  %p266_p6 = scmp.lt.s32.totalorder %s42_s13, %s42_s13 }
  0x2d   :  { %p267_p7 = scmp.lt.s32.totalorder %s265_s0, %s261_s21 }
  0x2f   :  { %p268_p8 = por %p267_p7, %p266_p6 }
  0x31   :  { %p269_p9 = pnand %p268_p8, %p262_p5 }
  0x33   :  { %272 = shalt.err (!%p269_p9)
}
  0x34   :  { %44 = dma.hbm_to_vmem [thread:$0]  %s391_s2, 16, %s42_s13, [#allocation7]  }
  0x35   :  { %295 = dma.done.wait [#allocation4], 256  }
  0x36   :  { %296 = vsyncadd [#allocation4], 4294967040 }
  0x37   :  { %297 = dma.done.wait [#allocation7], 272  }
  0x38   :  { %298 = vsyncadd [#allocation7], 4294967024  ;;  %vm59_vm0 = vcmask 785408   ;;  %v308_v0 = vmov 0.0   ;;  %vm309_vm1 = vmmov 0   ;;  %v205_v1 = vld [vmem:[#allocation6] sm:$0xff]  }
  0x39   :  { %60 = vst.msk [vmem:[#allocation2] sm:$0xff] %vm59_vm0, %v308_v0  ;;  %61 = vst.msk [vmem:[#allocation2 + $0x8] sm:$0xff] %vm59_vm0, %v308_v0  ;;  %187 = vmatprep.subr.bf16.mxu0 %v308_v0  ;;  %191 = vmatprep.mubr.msk.bf16.mxu0 %vm309_vm1, %v308_v0  ;;  %v206_v2 = vld [vmem:[#allocation6 + $0x8] sm:$0xff]   ;;  %v62_v3 = vld [vmem:[#allocation3] sm:$0xff]  ;;  %vm83_vm2 = vcmask 261120   ;;  %vm155_vm3 = vcmask 781312  }
  0x3a   :  { %188 = vmatpush3.bf16.msra.mxu0 %v205_v1  ;;  %v63_v4 = vld [vmem:[#allocation3 + $0x8] sm:$0xff]  ;;  %v179_v14 = vld [vmem:[#allocation8] ss:$0 sm:$0xff]  ;;  %s310_s2 = smov [#allocation9]  }
  0x3b   :  { %189 = vmatprep.subr.bf16.mxu0 %v308_v0  ;;  %v64_v5 = vpack.c.bf16 %v63_v4, %v62_v3  ;;  %s163_s26 = sshll.u32 %s310_s2, 4  ;;  %s164_s26 = int_to_ptr.vmem [resolvable:$true] %s163_s26 }
  0x3c   :  { %s273_s27 = scalar_lea.vmem %s164_s26, 128  ;;  %p278_p11 = scmp.lt.s32.totalorder %s164_s26, %s164_s26 }
  0x3d   :  { %p274_p10 = scmp.ne.s32.totalorder %s164_s26, %s273_s27  ;;  %p279_p12 = scmp.lt.s32.totalorder %s273_s27, %s273_s27 }
  0x3e   :  { %190 = vmatpush3.bf16.msra.mxu0 %v206_v2 }
  0x3f   :  { %p280_p13 = por %p279_p12, %p278_p11 }
  0x40   :  { %v65_v6 = vld [vmem:[#allocation2] sm:$0xff]  ;;  %v66_v8 = vld [vmem:[#allocation2 + $0x8] sm:$0xff] }
  0x41   :  { %192 = vmatmul.mubr.msk.bf16.vlgmr.msra.gmra.mrb[0].mxu0 %vm83_vm2, %v64_v5  ;;  %p281_p0 = pnand %p280_p13, %p274_p10 }
 0x114   :  { %v121_v7 = vpop.f32.mrb[0].mxu0 }
 0x115   :  { %v128_v9 = vadd.f32 %v121_v7, %v65_v6  ;;  %v193_v10 = vpop.f32.mrb[1].mxu0 }
 0x116   :  { %v124_v11 = vpop.f32.mrb[2].mxu0 }
 0x117   :  { %131 = vst.msk [vmem:[#allocation2] sm:$0xff] %vm59_vm0, %v128_v9  ;;  %v129_v12 = vadd.f32 %v124_v11, %v66_v8  ;;  %v194_v13 = vpop.f32.mrb[3].mxu0 }
 0x119   :  { %132 = vst.msk [vmem:[#allocation2 + $0x8] sm:$0xff] %vm59_vm0, %v129_v12 }
 0x11e   :  { %v136_v15 = vld [vmem:[#allocation2] sm:$0xff] }
 0x11f   :  { %v145_v16 = vadd.f32 %v179_v14, %v136_v15 }
 0x120   :  { %v137_v17 = vld [vmem:[#allocation2 + $0x8] sm:$0xff] }
 0x121   :  { %v146_v18 = vadd.f32 %v179_v14, %v137_v17  ;;  %v182_v19 = vpack.c.bf16 %v145_v16, %v145_v16 }
 0x123   :  { %v183_v20 = vpack.c.bf16 %v146_v18, %v146_v18  ;;  %156 = vst.msk [vmem:[#allocation9] sm:$0xf] %vm155_vm3, %v182_v19 }
 0x125   :  { %157 = vst.msk [vmem:[#allocation9 + $0x4] sm:$0xf] %vm155_vm3, %v183_v20 }
 0x126   :  { %284 = shalt.err (!%p281_p0)
}
 0x127   :  { %s285_s30 = scalar_lea.hbm %s392_s3, 128 }
 0x128   :  { %p286_p1 = scmp.ne.s32.totalorder %s392_s3, %s285_s30  ;;  %p289_p2 = scmp.lt.u32.totalorder %s285_s30, %s392_s3 }
 0x12a   :  { %p291_p3 = pnand %p289_p2, %p286_p1 }
 0x12c   :  { %294 = shalt.err (!%p291_p3)
}
 0x12d   :  { %169 = dma.vmem_to_hbm [thread:$0]  %s164_s26, 128, %s392_s3, [#allocation5], %s302_s22, %s302_s22, %s303_s23  }
 0x12e   :  { %299 = dma.done.wait [#allocation5], 128  }
 0x12f   :  { %300 = vsyncadd [#allocation5], 4294967168 }
 0x130   :  { %173 = vsyncpa [#allocation4], 1 }
 0x131   :  { %174 = vsyncpa [#allocation7], 1 }
 0x132   :  { %175 = vsyncpa [#allocation5], 1 }

</bundles_post_ra>
